<compile_context>
chip_gen: v5e
topology: v5e:2x2
jax: 0.10.0
libtpu: 0.0.40
codegen_flags: <defaults>
</compile_context>

<pallas_src>
import functools
import math

import jax
import jax.numpy as jnp
from jax.experimental import pallas as pl
from jax.experimental.pallas import tpu as pltpu


def _round_up(x, m):
    return ((x + m - 1) // m) * m


# ----------------------------------------------------------------------------
# Conv backbone stand-in + hoisted attention projection (fused, tiled over rows)
# ----------------------------------------------------------------------------
def _conv_attn_kernel(x_ref, w_ref, b_ref, wa_ref, f_ref, aw_ref):
    # f = patches @ W_conv + b ; aw = f @ Wa   (per row tile)
    f = (jnp.dot(x_ref[...], w_ref[...], preferred_element_type=jnp.float32)
         + b_ref[...])
    f_ref[...] = f
    aw_ref[...] = jnp.dot(f, wa_ref[...], preferred_element_type=jnp.float32)


def conv_features(patches, w_mat, bias_row, wa, *, max_tile_m=512):
    """patches (M, K) -> (features (M, A), features @ Wa (M, H))."""
    M, K = patches.shape
    A = w_mat.shape[1]
    H = wa.shape[1]
    # Mem-bound streaming matmul: biggest row tile that makes sense (<=512 f32
    # keeps the v7x 64 MiB budget comfortable at production K/A/H).
    tile_m = min(max_tile_m, _round_up(M, 8))
    M_pad = _round_up(M, tile_m)
    if M_pad != M:
        patches = jnp.pad(patches, ((0, M_pad - M), (0, 0)))
    feats, aw = pl.pallas_call(
        _conv_attn_kernel,
        out_shape=(jax.ShapeDtypeStruct((M_pad, A), jnp.float32),
                   jax.ShapeDtypeStruct((M_pad, H), jnp.float32)),
        grid_spec=pltpu.PrefetchScalarGridSpec(
            num_scalar_prefetch=0,
            grid=(M_pad // tile_m,),
            in_specs=[
                pl.BlockSpec((tile_m, K), lambda i: (i, 0)),
                pl.BlockSpec((K, A), lambda i: (0, 0)),
                pl.BlockSpec((1, A), lambda i: (0, 0)),
                pl.BlockSpec((A, H), lambda i: (0, 0)),
            ],
            out_specs=(pl.BlockSpec((tile_m, A), lambda i: (i, 0)),
                       pl.BlockSpec((tile_m, H), lambda i: (i, 0)))),
        compiler_params=pltpu.CompilerParams(
            dimension_semantics=("parallel",)),
    )(patches, w_mat, bias_row, wa)
    return feats[:M], aw[:M]


# ----------------------------------------------------------------------------
# lt head (hoisted out of the recurrence): logits + softmax over all rows
# ----------------------------------------------------------------------------
def _lt_head_kernel(y_ref, w_ref, b_ref, logit_ref, prob_ref):
    logits = (jnp.dot(y_ref[...], w_ref[...], preferred_element_type=jnp.float32)
              + b_ref[...])
    logit_ref[...] = logits
    m = jnp.max(logits, axis=-1, keepdims=True)
    e = jnp.exp(logits - m)
    prob_ref[...] = e / jnp.sum(e, axis=-1, keepdims=True)


def lt_head(ys2d, w_lt, b_lt, *, max_tile_r=512):
    R, H = ys2d.shape
    V = w_lt.shape[1]
    tile_r = min(max_tile_r, _round_up(R, 8))
    R_pad = _round_up(R, tile_r)
    if R_pad != R:
        ys2d = jnp.pad(ys2d, ((0, R_pad - R), (0, 0)))
    logits, probs = pl.pallas_call(
        _lt_head_kernel,
        out_shape=(jax.ShapeDtypeStruct((R_pad, V), jnp.float32),
                   jax.ShapeDtypeStruct((R_pad, V), jnp.float32)),
        grid_spec=pltpu.PrefetchScalarGridSpec(
            num_scalar_prefetch=0,
            grid=(R_pad // tile_r,),
            in_specs=[
                pl.BlockSpec((tile_r, H), lambda i: (i, 0)),
                pl.BlockSpec((H, V), lambda i: (0, 0)),
                pl.BlockSpec((1, V), lambda i: (0, 0)),
            ],
            out_specs=(pl.BlockSpec((tile_r, V), lambda i: (i, 0)),
                       pl.BlockSpec((tile_r, V), lambda i: (i, 0)))),
        compiler_params=pltpu.CompilerParams(
            dimension_semantics=("parallel",)),
    )(ys2d, w_lt, b_lt)
    return logits[:R], probs[:R]


# ----------------------------------------------------------------------------
# Recurrent attention encoder kernel: grid = (batch_tiles,), whole sequence
# processed by an in-kernel loop over L (outputs/state resident in VMEM).
# ----------------------------------------------------------------------------
def _attn_rnn_kernel(n_layers, H, L,
                     aw_ref, f_ref, whhh_ref, v_ref, wih_ref, wcat_ref,
                     bias_ref, h0_ref, c0_ref,
                     ys_ref, betas_ref, h_out_ref, c_out_ref):
    # h_out / c_out double as the carried LSTM state for the whole sequence.
    h_out_ref[...] = h0_ref[...]
    c_out_ref[...] = c0_ref[...]

    # L is static and small -> plain Python loop: fully unrolled straight-line
    # code, all indices static, zero per-step pipeline overhead.
    # TODO(synk): for long sequences that overflow VMEM, reintroduce an
    # 'arbitrary' L grid axis or pltpu.emit_pipeline over L chunks.
    for l in range(L):
        attn = f_ref[l]                            # (TB, N, A)
        prev_out = h_out_ref[n_layers - 1]         # (TB, H): h_{t-1}[last]

        # ONE fused matmul for everything that depends on h_{t-1}[last]:
        #   prev_out @ [Wh | W_hh4] -> attention proj + last-layer gate term.
        pre = jnp.dot(prev_out, whhh_ref[...],
                      preferred_element_type=jnp.float32)        # (TB, H+4H)

        # attention scores: attn @ Wa was hoisted to the conv kernel (aw_ref).
        t = jnp.tanh(aw_ref[l] + pre[:, :H][:, None, :])          # (TB, N, H)
        scores = jnp.sum(t * v_ref[...], axis=-1)                 # (TB, N)

        # softmax over N (lane axis) == functional.softmax(dim=0) on (N, B).
        m = jnp.max(scores, axis=-1, keepdims=True)
        e = jnp.exp(scores - m)
        w = e / jnp.sum(e, axis=-1, keepdims=True)                # (TB, N)
        # NOTE: the module divides by clamp(sum(w), 1e-5); w is a softmax so
        # sum(w)==1 and the divide is dropped.
        # TODO(synk): restore it if the prior_map (Ms) path is ever added.

        # context vector on VPU+XLU (broadcast-mult + sublane reduce): keeps
        # the MXU slot free for the gate matmul that follows.
        s = jnp.sum(w[:, :, None] * attn, axis=1)                 # (TB, A)

        # stacked LSTM cells, fused 4H gate matmuls (gate order i|f|g|o).
        # NOTE: as in the PyTorch module, one LSTMCell(attn_size, hidden) is
        # reused for every layer (only type-checks when attn_size == hidden).
        out = s
        for layer in range(n_layers):
            h_prev = h_out_ref[layer]
            c_prev = c_out_ref[layer]
            if layer == n_layers - 1:
                # recurrent half already computed in `pre`
                gates = (jnp.dot(out, wih_ref[...],
                                 preferred_element_type=jnp.float32)
                         + pre[:, H:] + bias_ref[...])            # (TB, 4H)
            else:
                xh = jnp.concatenate([out, h_prev], axis=-1)      # (TB, A+H)
                gates = (jnp.dot(xh, wcat_ref[...],
                                 preferred_element_type=jnp.float32)
                         + bias_ref[...])
            i_g = jax.nn.sigmoid(gates[:, 0 * H:1 * H])
            f_g = jax.nn.sigmoid(gates[:, 1 * H:2 * H])
            g_g = jnp.tanh(gates[:, 2 * H:3 * H])
            o_g = jax.nn.sigmoid(gates[:, 3 * H:4 * H])
            c_n = f_g * c_prev + i_g * g_g
            h_n = o_g * jnp.tanh(c_n)
            out = h_n
            # immediate writes: layer `layer` is never re-read this step.
            h_out_ref[layer] = h_n
            c_out_ref[layer] = c_n

        ys_ref[l] = out                                           # (TB, H)
        betas_ref[l] = w                                          # (TB, N)


def attn_encoder_forward(Xs, h0, params, *, hidden_size, attn_size,
                         output_size, n_layers, patch):
    B, L, C, Himg, Wimg = Xs.shape
    hmap, wmap = Himg // patch, Wimg // patch
    N = hmap * wmap
    A, H, V = attn_size, hidden_size, output_size

    # --- conv backbone + hoisted attention projection (fused Pallas kernel) ---
    # Patches laid out so the matmul rows are already in (L, B, N) order.
    # TODO(synk): fold the im2col transpose into the conv kernel's index_map to
    # avoid the extra HBM pass at real image sizes.
    x = Xs.reshape(B, L, C, hmap, patch, wmap, patch)
    patches = jnp.transpose(x, (1, 0, 3, 5, 2, 4, 6)).reshape(
        L * B * N, C * patch * patch)
    feats_flat, aw_flat = conv_features(
        patches, params['conv_w_mat'], params['conv_b'], params['Wa'])
    Fs = feats_flat.reshape(L, B, N, A)       # (L, B, N, A)
    AW = aw_flat.reshape(L, B, N, H)          # hoisted  attn @ Wa

    # PyTorch forward: h0 given as (B, n_layers, H); transpose to layers-first.
    h0_h = jnp.transpose(h0[0], (1, 0, 2))    # (n_layers, B, H)
    h0_c = jnp.transpose(h0[1], (1, 0, 2))

    # Fused weights (built once, XLA-side, outside the recurrence):
    #   Wh_hh4 = [Wh | W_hh4]   (H, 5H): one matmul per step for the last layer
    #   W_cat4 = [W_ih4; W_hh4] (A+H, 4H): one gate matmul per non-last layer
    Wh_hh4 = jnp.concatenate([params['Wh'], params['W_hh4']], axis=1)
    W_cat4 = jnp.concatenate([params['W_ih4'], params['W_hh4']], axis=0)

    # Single TensorCore on v5e/v6e -> keep the batch in one tile (splitting a
    # serialized 'parallel' axis is pure pipeline overhead).
    # TODO(synk): on v7x (2 TCs) split the batch axis when B % 16 == 0 so each
    # tile is still >= 8 sublanes.
    b_tile = B
    nb = B // b_tile

    kernel = functools.partial(_attn_rnn_kernel, n_layers, H, L)

    def wspec(shape):
        nd = len(shape)
        return pl.BlockSpec(shape, lambda b, _nd=nd: (0,) * _nd)

    in_specs = [
        pl.BlockSpec((L, b_tile, N, H), lambda b: (0, b, 0, 0)),   # AW
        pl.BlockSpec((L, b_tile, N, A), lambda b: (0, b, 0, 0)),   # Fs
        wspec((H, 5 * H)),                                         # [Wh|W_hh4]
        wspec((1, H)),                                             # vT
        wspec((A, 4 * H)),                                         # W_ih4
        wspec((A + H, 4 * H)),                                     # W_cat4
        wspec((1, 4 * H)),                                         # bias4
        pl.BlockSpec((n_layers, b_tile, H), lambda b: (0, b, 0)),  # h0
        pl.BlockSpec((n_layers, b_tile, H), lambda b: (0, b, 0)),  # c0
    ]
    out_specs = (
        pl.BlockSpec((L, b_tile, H), lambda b: (0, b, 0)),         # ys
        pl.BlockSpec((L, b_tile, N), lambda b: (0, b, 0)),         # betas
        pl.BlockSpec((n_layers, b_tile, H), lambda b: (0, b, 0)),  # h final
        pl.BlockSpec((n_layers, b_tile, H), lambda b: (0, b, 0)),  # c final
    )
    out_shapes = (
        jax.ShapeDtypeStruct((L, B, H), jnp.float32),
        jax.ShapeDtypeStruct((L, B, N), jnp.float32),
        jax.ShapeDtypeStruct((n_layers, B, H), jnp.float32),
        jax.ShapeDtypeStruct((n_layers, B, H), jnp.float32),
    )

    ys, betas, h_f, c_f = pl.pallas_call(
        kernel,
        out_shape=out_shapes,
        grid_spec=pltpu.PrefetchScalarGridSpec(
            num_scalar_prefetch=0, grid=(nb,),
            in_specs=in_specs, out_specs=out_specs),
        compiler_params=pltpu.CompilerParams(
            dimension_semantics=("parallel",)),
    )(AW, Fs, Wh_hh4, params['vT'], params['W_ih4'], W_cat4,
      params['bias4'], h0_h, h0_c)

    # --- lt head (hoisted): one matmul + softmax over all L*B rows ---
    logits2d, probs2d = lt_head(ys.reshape(L * B, H),
                                params['W_lt'], params['b_lt'])
    logits = jnp.transpose(logits2d.reshape(L, B, V), (1, 0, 2))   # (B, L, V)
    probs = jnp.transpose(probs2d.reshape(L, B, V), (1, 0, 2))     # (B, L, V)
    betas = jnp.transpose(betas, (1, 0, 2)).reshape(B, L, hmap, wmap)
    return logits, probs, (h_f, c_f), betas


# ----------------------------------------------------------------------------
# Deterministic parameter initialization (shapes per the module __init__)
# ----------------------------------------------------------------------------
def init_params(key, *, in_channels, patch, attn_size, hidden_size,
                output_size):
    A, H, V = attn_size, hidden_size, output_size
    Kdim = in_channels * patch * patch
    ks = jax.random.split(key, 10)

    def u(k, shape, bound):
        return jax.random.uniform(k, shape, jnp.float32, -bound, bound)

    conv_w = u(ks[0], (A, Kdim), math.sqrt(6.0 / (Kdim + A)))
    conv_b = u(ks[1], (1, A), 0.1)
    # NOTE: the module inits Wa/Wh to zeros; random values used here so the
    # attention path is exercised non-trivially.
    Wa = u(ks[2], (A, H), math.sqrt(6.0 / (A + H)))
    Wh = u(ks[3], (H, H), math.sqrt(6.0 / (H + H)))
    v = u(ks[4], (H, 1), math.sqrt(6.0 / (H + 1)))
    bound = 1.0 / math.sqrt(H)
    W_ih = u(ks[5], (4 * H, A), bound)   # PyTorch LSTMCell rows: [i; f; g; o]
    W_hh = u(ks[6], (4 * H, H), bound)
    b_ih = u(ks[7], (4 * H,), bound)
    b_hh = u(ks[8], (4 * H,), bound)
    W_lt = u(ks[9], (V, H), bound)
    b_lt = jnp.zeros((V,), jnp.float32)
    return {
        'conv_w_mat': jnp.transpose(conv_w),        # (Kdim, A)
        'conv_b': conv_b,                           # (1, A)
        'Wa': Wa, 'Wh': Wh,
        'vT': jnp.transpose(v),                     # (1, H)
        # fused LSTM gate weights (gate order i|f|g|o) and pre-summed bias
        'W_ih4': jnp.transpose(W_ih),               # (A, 4H)
        'W_hh4': jnp.transpose(W_hh),               # (H, 4H)
        'bias4': (b_ih + b_hh).reshape(1, 4 * H),   # (1, 4H)
        'W_lt': jnp.transpose(W_lt),                # (H, V)
        'b_lt': b_lt.reshape(1, V),
    }


# ----------------------------------------------------------------------------
# Pure-JAX reference (mirror of the PyTorch forward) for correctness check
# ----------------------------------------------------------------------------
def reference_forward(Xs, h0, params, *, hidden_size, n_layers, patch):
    B, L, C, Hi, Wi = Xs.shape
    hmap, wmap = Hi // patch, Wi // patch
    N = hmap * wmap
    H = hidden_size
    x = Xs.reshape(B, L, C, hmap, patch, wmap, patch)
    patches = jnp.transpose(x, (1, 0, 3, 5, 2, 4, 6)).reshape(L * B * N, -1)
    feats = patches @ params['conv_w_mat'] + params['conv_b']
    A = feats.shape[-1]
    Fs = feats.reshape(L, B, N, A)
    h = jnp.transpose(h0[0], (1, 0, 2))
    c = jnp.transpose(h0[1], (1, 0, 2))
    vvec = params['vT'][0]
    ys, betas = [], []
    for i in range(L):
        attn = Fs[i]                                         # (B, N, A)
        prev = h[-1]
        aw = jnp.einsum('bna,ah->bnh', attn, params['Wa']) \
            + (prev @ params['Wh'])[:, None, :]
        sc = jnp.sum(jnp.tanh(aw) * vvec, axis=-1)           # (B, N)
        w = jax.nn.softmax(sc, axis=-1)
        denom = jnp.maximum(w.sum(-1, keepdims=True), 1e-5)  # == 1 (softmax)
        s = jnp.einsum('bn,bna->ba', w, attn) / denom
        out = s
        hs, cs = [], []
        for l in range(n_layers):
            gates = (out @ params['W_ih4'] + h[l] @ params['W_hh4']
                     + params['bias4'])
            i_g = jax.nn.sigmoid(gates[:, :H])
            f_g = jax.nn.sigmoid(gates[:, H:2 * H])
            g_g = jnp.tanh(gates[:, 2 * H:3 * H])
            o_g = jax.nn.sigmoid(gates[:, 3 * H:4 * H])
            c_n = f_g * c[l] + i_g * g_g
            h_n = o_g * jnp.tanh(c_n)
            out = h_n
            hs.append(h_n)
            cs.append(c_n)
        h = jnp.stack(hs)
        c = jnp.stack(cs)
        ys.append(out)
        betas.append(w)
    ys = jnp.stack(ys)                                        # (L, B, H)
    betas = jnp.stack(betas)                                  # (L, B, N)
    logits = ys @ params['W_lt'] + params['b_lt']
    probs = jax.nn.softmax(logits, axis=-1)
    betas = jnp.transpose(betas, (1, 0, 2)).reshape(B, L, hmap, wmap)
    return (jnp.transpose(logits, (1, 0, 2)),
            jnp.transpose(probs, (1, 0, 2)), (h, c), betas)


if __name__ == "__main__":
    B, L, C, IMG = 2, 8, 4, 16
    PATCH = 4
    A, H, V, NL = 32, 32, 5, 1   # attn_size, hidden_size, output_size, n_layers

    key = jax.random.PRNGKey(0)
    kx, kh, kc, kp = jax.random.split(key, 4)
    Xs = jax.random.normal(kx, (B, L, C, IMG, IMG), jnp.float32)
    h0 = (jax.random.normal(kh, (B, NL, H), jnp.float32),
          jax.random.normal(kc, (B, NL, H), jnp.float32))
    params = init_params(kp, in_channels=C, patch=PATCH, attn_size=A,
                         hidden_size=H, output_size=V)

    logits, probs, (hf, cf), betas = attn_encoder_forward(
        Xs, h0, params, hidden_size=H, attn_size=A, output_size=V,
        n_layers=NL, patch=PATCH)
    jax.block_until_ready((logits, probs, hf, cf, betas))

    rl, rp, (rh, rc), rb = reference_forward(
        Xs, h0, params, hidden_size=H, n_layers=NL, patch=PATCH)
    for got, ref in ((logits, rl), (probs, rp), (hf, rh), (cf, rc),
                     (betas, rb)):
        assert got.shape == ref.shape
        assert jnp.allclose(got, ref, atol=2e-4, rtol=2e-4), \
            "mismatch vs reference"
    print("KERNEL_OK")
</pallas_src>

<mosaic_0001>
module attributes {stable_mosaic.version = 11 : i64} {
  func.func @_conv_attn_kernel(%arg0: i32, %arg1: memref<256x64xf32, #tpu.memory_space<vmem>>, %arg2: memref<64x32xf32, #tpu.memory_space<vmem>>, %arg3: memref<1x32xf32, #tpu.memory_space<vmem>>, %arg4: memref<32x32xf32, #tpu.memory_space<vmem>>, %arg5: memref<256x32xf32, #tpu.memory_space<vmem>>, %arg6: memref<256x32xf32, #tpu.memory_space<vmem>>) attributes {dimension_semantics = [#tpu.dimension_semantics<parallel>], iteration_bounds = array<i64: 1>, scalar_prefetch = 0 : i64, scratch_operands = 0 : i64, tpu.core_type = #tpu.core_type<tc>, window_params = [{transform_indices = @transform_0, window_bounds = array<i64: 256, 64>}, {pipeline_mode = #tpu.pipeline_mode<synchronous>, transform_indices = @transform_1, window_bounds = array<i64: 64, 32>}, {pipeline_mode = #tpu.pipeline_mode<synchronous>, transform_indices = @transform_2, window_bounds = array<i64: 1, 32>}, {pipeline_mode = #tpu.pipeline_mode<synchronous>, transform_indices = @transform_3, window_bounds = array<i64: 32, 32>}, {transform_indices = @transform_4, window_bounds = array<i64: 256, 32>}, {transform_indices = @transform_5, window_bounds = array<i64: 256, 32>}]} {
    %c0 = arith.constant 0 : index
    %c0_0 = arith.constant 0 : index
    %0 = vector.load %arg1[%c0, %c0_0] : memref<256x64xf32, #tpu.memory_space<vmem>>, vector<256x64xf32>
    %c0_1 = arith.constant 0 : index
    %c0_2 = arith.constant 0 : index
    %1 = vector.load %arg2[%c0_1, %c0_2] : memref<64x32xf32, #tpu.memory_space<vmem>>, vector<64x32xf32>
    %cst = arith.constant dense<0.000000e+00> : vector<256x32xf32>
    %2 = tpu.matmul %0, %1, %cst {dimension_numbers = #tpu.dot_dimension_numbers<[1], [0], [0], [1], [0, 0, 1, 1], [], []>} : vector<256x64xf32>, vector<64x32xf32>, vector<256x32xf32> -> vector<256x32xf32>
    %c0_3 = arith.constant 0 : index
    %c0_4 = arith.constant 0 : index
    %3 = vector.load %arg3[%c0_3, %c0_4] : memref<1x32xf32, #tpu.memory_space<vmem>>, vector<1x32xf32>
    %4 = vector.broadcast %3 : vector<1x32xf32> to vector<256x32xf32>
    %5 = arith.addf %2, %4 : vector<256x32xf32>
    %c0_5 = arith.constant 0 : index
    %c0_6 = arith.constant 0 : index
    %6 = vector.load %arg5[%c0_5, %c0_6] : memref<256x32xf32, #tpu.memory_space<vmem>>, vector<256x32xf32>
    tpu.vector_store %arg5[%c0_5, %c0_6], %5 {strides = array<i32>} : memref<256x32xf32, #tpu.memory_space<vmem>>, vector<256x32xf32>,
    %c0_7 = arith.constant 0 : index
    %c0_8 = arith.constant 0 : index
    %7 = vector.load %arg4[%c0_7, %c0_8] : memref<32x32xf32, #tpu.memory_space<vmem>>, vector<32x32xf32>
    %cst_9 = arith.constant dense<0.000000e+00> : vector<256x32xf32>
    %8 = tpu.matmul %5, %7, %cst_9 {dimension_numbers = #tpu.dot_dimension_numbers<[1], [0], [0], [1], [0, 0, 1, 1], [], []>} : vector<256x32xf32>, vector<32x32xf32>, vector<256x32xf32> -> vector<256x32xf32>
    %c0_10 = arith.constant 0 : index
    %c0_11 = arith.constant 0 : index
    %9 = vector.load %arg6[%c0_10, %c0_11] : memref<256x32xf32, #tpu.memory_space<vmem>>, vector<256x32xf32>
    tpu.vector_store %arg6[%c0_10, %c0_11], %8 {strides = array<i32>} : memref<256x32xf32, #tpu.memory_space<vmem>>, vector<256x32xf32>,
    return
  }
  func.func @transform_0(%arg0: i32) -> (i32, i32) {
    %c0_i32 = arith.constant 0 : i32
    %c0_i32_0 = arith.constant 0 : i32
    return %arg0, %c0_i32 : i32, i32
  }
  func.func @transform_1(%arg0: i32) -> (i32, i32) {
    %c0_i32 = arith.constant 0 : i32
    %c0_i32_0 = arith.constant 0 : i32
    %c0_i32_1 = arith.constant 0 : i32
    return %c0_i32, %c0_i32_0 : i32, i32
  }
  func.func @transform_2(%arg0: i32) -> (i32, i32) {
    %c0_i32 = arith.constant 0 : i32
    %c0_i32_0 = arith.constant 0 : i32
    %c0_i32_1 = arith.constant 0 : i32
    return %c0_i32, %c0_i32_0 : i32, i32
  }
  func.func @transform_3(%arg0: i32) -> (i32, i32) {
    %c0_i32 = arith.constant 0 : i32
    %c0_i32_0 = arith.constant 0 : i32
    %c0_i32_1 = arith.constant 0 : i32
    return %c0_i32, %c0_i32_0 : i32, i32
  }
  func.func @transform_4(%arg0: i32) -> (i32, i32) {
    %c0_i32 = arith.constant 0 : i32
    %c0_i32_0 = arith.constant 0 : i32
    return %arg0, %c0_i32 : i32, i32
  }
  func.func @transform_5(%arg0: i32) -> (i32, i32) {
    %c0_i32 = arith.constant 0 : i32
    %c0_i32_0 = arith.constant 0 : i32
    return %arg0, %c0_i32 : i32, i32
  }
}

</mosaic_0001>

<bundles_post_ra>
// kernel: tpu_custom_call.1
= control target key start
LH: loop header
LB: loop body
LE: loop exit
PB: predicated region body
PF: predicated region fallthrough
CT: control target
= control target key end

     0   :  { %vm63_vm0 = vcmask 523264   ;;  %vm273_vm1 = vcmask 261120   ;;  %s1159_s1 = inlined_call_operand.vmem [shape: f32[64,32], index: 1, kind: input, shape index: {}]   ;;  %s1160_s2 = inlined_call_operand.vmem [shape: f32[1,32], index: 2, kind: input, shape index: {}]   ;;  %s1161_s0 = inlined_call_operand.vmem [shape: f32[256,64], index: 0, kind: input, shape index: {}]   ;;  %s1162_s3 = inlined_call_operand.vmem [shape: f32[32,32], index: 3, kind: input, shape index: {}]   ;;  %s1163_s4 = inlined_call_operand.vmem [shape: f32[256,32], index: 4, kind: output, shape index: {0}]   ;;  %s1164_s5 = inlined_call_operand.vmem [shape: f32[256,32], index: 5, kind: output, shape index: {1}]  }
   0x1   :  { %v58_v0 = vld [vmem:[%s1159_s1 + $0x38] sm:$0xff]  ;;  %v57_v1 = vld [vmem:[%s1159_s1 + $0x30] sm:$0xff]  ;;  %v56_v2 = vld [vmem:[%s1159_s1 + $0x28] sm:$0xff] }
   0x2   :  { %168 = vmatpush.msra.mxu0 %v58_v0  ;;  %623 = vmatpush.msra.mxu2 %v58_v0  ;;  %v55_v3 = vld [vmem:[%s1159_s1 + $0x20] sm:$0xff]  ;;  %v54_v4 = vld [vmem:[%s1159_s1 + $0x18] sm:$0xff]  ;;  %v53_v5 = vld [vmem:[%s1159_s1 + $0x10] sm:$0xff] }
   0x3   :  { %v52_v6 = vld [vmem:[%s1159_s1 + $0x8] sm:$0xff]  ;;  %v51_v7 = vld [vmem:[%s1159_s1] sm:$0xff]  ;;  %v21_v12 = vld [vmem:[%s1161_s0 + $0x10] sm:$0xff] }
   0x4   :  { %169 = vmatpush.msra.mxu0 %v57_v1  ;;  %624 = vmatpush.msra.mxu2 %v57_v1  ;;  %v19_v8 = vld [vmem:[%s1161_s0] sm:$0xff]  ;;  %v20_v10 = vld [vmem:[%s1161_s0 + $0x8] sm:$0xff]  ;;  %v37_v13 = vld [vmem:[%s1161_s0 + $0x90] sm:$0xff] }
   0x5   :  { %v35_v9 = vld [vmem:[%s1161_s0 + $0x80] sm:$0xff]  ;;  %v36_v11 = vld [vmem:[%s1161_s0 + $0x88] sm:$0xff]  ;;  %v22_v14 = vld [vmem:[%s1161_s0 + $0x18] sm:$0xff] }
   0x6   :  { %170 = vmatpush.msra.mxu0 %v56_v2  ;;  %625 = vmatpush.msra.mxu2 %v56_v2  ;;  %v38_v15 = vld [vmem:[%s1161_s0 + $0x98] sm:$0xff]  ;;  %v23_v16 = vld [vmem:[%s1161_s0 + $0x20] sm:$0xff]  ;;  %v24_v18 = vld [vmem:[%s1161_s0 + $0x28] sm:$0xff] }
   0x7   :  { %v39_v17 = vld [vmem:[%s1161_s0 + $0xa0] sm:$0xff]  ;;  %v40_v19 = vld [vmem:[%s1161_s0 + $0xa8] sm:$0xff]  ;;  %v25_v20 = vld [vmem:[%s1161_s0 + $0x30] sm:$0xff] }
   0x8   :  { %171 = vmatpush.msra.mxu0 %v55_v3  ;;  %626 = vmatpush.msra.mxu2 %v55_v3  ;;  %v41_v21 = vld [vmem:[%s1161_s0 + $0xb0] sm:$0xff]  ;;  %v26_v22 = vld [vmem:[%s1161_s0 + $0x38] sm:$0xff]  ;;  %v27_v24 = vld [vmem:[%s1161_s0 + $0x40] sm:$0xff] }
   0x9   :  { %v42_v23 = vld [vmem:[%s1161_s0 + $0xb8] sm:$0xff]  ;;  %v43_v25 = vld [vmem:[%s1161_s0 + $0xc0] sm:$0xff]  ;;  %v28_v26 = vld [vmem:[%s1161_s0 + $0x48] sm:$0xff] }
   0xa   :  { %172 = vmatpush.msra.mxu0 %v54_v4  ;;  %627 = vmatpush.msra.mxu2 %v54_v4  ;;  %v44_v27 = vld [vmem:[%s1161_s0 + $0xc8] sm:$0xff]  ;;  %v29_v28 = vld [vmem:[%s1161_s0 + $0x50] sm:$0xff]  ;;  %v30_v30 = vld [vmem:[%s1161_s0 + $0x58] sm:$0xff] }
   0xb   :  { %v45_v29 = vld [vmem:[%s1161_s0 + $0xd0] sm:$0xff]  ;;  %v46_v31 = vld [vmem:[%s1161_s0 + $0xd8] sm:$0xff]  ;;  %v307_v34 = vld [vmem:[%s1162_s3 + $0x8] sm:$0xff] }
   0xc   :  { %173 = vmatpush.msra.mxu0 %v53_v5  ;;  %628 = vmatpush.msra.mxu2 %v53_v5  ;;  %v309_v32 = vld [vmem:[%s1162_s3 + $0x18] sm:$0xff]  ;;  %v308_v33 = vld [vmem:[%s1162_s3 + $0x10] sm:$0xff]  ;;  %v31_v35 = vld [vmem:[%s1161_s0 + $0x60] sm:$0xff] }
   0xd   :  { %418 = vmatpush.msra.mxu1 %v309_v32  ;;  %631 = vmatpush.msra.mxu3 %v309_v32  ;;  %v47_v36 = vld [vmem:[%s1161_s0 + $0xe0] sm:$0xff]  ;;  %v32_v38 = vld [vmem:[%s1161_s0 + $0x68] sm:$0xff]  ;;  %v33_v40 = vld [vmem:[%s1161_s0 + $0x70] sm:$0xff] }
   0xe   :  { %174 = vmatpush.msra.mxu0 %v52_v6  ;;  %629 = vmatpush.msra.mxu2 %v52_v6  ;;  %v306_v37 = vld [vmem:[%s1162_s3] sm:$0xff]  ;;  %v48_v39 = vld [vmem:[%s1161_s0 + $0xe8] sm:$0xff]  ;;  %v49_v41 = vld [vmem:[%s1161_s0 + $0xf0] sm:$0xff] }
   0xf   :  { %419 = vmatpush.msra.mxu1 %v308_v33  ;;  %632 = vmatpush.msra.mxu3 %v308_v33  ;;  %v34_v42 = vld [vmem:[%s1161_s0 + $0x78] sm:$0xff]  ;;  %v833_v44 = vld [vmem:[%s1160_s2] ss:$0 sm:$0xff] }
  0x10   :  { %175 = vmatpush.msra.mxu0 %v51_v7  ;;  %630 = vmatpush.msra.mxu2 %v51_v7  ;;  %v50_v43 = vld [vmem:[%s1161_s0 + $0xf8] sm:$0xff] }
  0x11   :  { %559 = vmatmul.msk.f32.vlgmr.msra.gmra.mxu0 %vm63_vm0, %v19_v8  ;;  %575 = vmatmul.msk.f32.vlgmr.msra.gmra.mxu2 %vm63_vm0, %v35_v9 }
  0x12   :  { %420 = vmatpush.msra.mxu1 %v307_v34  ;;  %633 = vmatpush.msra.mxu3 %v307_v34 }
  0x14   :  { %421 = vmatpush.msra.mxu1 %v306_v37  ;;  %634 = vmatpush.msra.mxu3 %v306_v37 }
  0x19   :  { %560 = vmatmul.msk.f32.gmra.mxu0 %vm63_vm0, %v20_v10  ;;  %576 = vmatmul.msk.f32.gmra.mxu2 %vm63_vm0, %v36_v11 }
  0x21   :  { %561 = vmatmul.msk.f32.gmra.mxu0 %vm63_vm0, %v21_v12  ;;  %577 = vmatmul.msk.f32.gmra.mxu2 %vm63_vm0, %v37_v13 }
  0x29   :  { %562 = vmatmul.msk.f32.gmra.mxu0 %vm63_vm0, %v22_v14  ;;  %578 = vmatmul.msk.f32.gmra.mxu2 %vm63_vm0, %v38_v15 }
  0x31   :  { %563 = vmatmul.msk.f32.gmra.mxu0 %vm63_vm0, %v23_v16  ;;  %579 = vmatmul.msk.f32.gmra.mxu2 %vm63_vm0, %v39_v17 }
  0x39   :  { %564 = vmatmul.msk.f32.gmra.mxu0 %vm63_vm0, %v24_v18  ;;  %580 = vmatmul.msk.f32.gmra.mxu2 %vm63_vm0, %v40_v19 }
  0x41   :  { %565 = vmatmul.msk.f32.gmra.mxu0 %vm63_vm0, %v25_v20  ;;  %581 = vmatmul.msk.f32.gmra.mxu2 %vm63_vm0, %v41_v21 }
  0x49   :  { %566 = vmatmul.msk.f32.gmra.mxu0 %vm63_vm0, %v26_v22  ;;  %582 = vmatmul.msk.f32.gmra.mxu2 %vm63_vm0, %v42_v23 }
  0x51   :  { %567 = vmatmul.msk.f32.gmra.mxu0 %vm63_vm0, %v27_v24  ;;  %583 = vmatmul.msk.f32.gmra.mxu2 %vm63_vm0, %v43_v25 }
  0x59   :  { %568 = vmatmul.msk.f32.gmra.mxu0 %vm63_vm0, %v28_v26  ;;  %584 = vmatmul.msk.f32.gmra.mxu2 %vm63_vm0, %v44_v27 }
  0x61   :  { %569 = vmatmul.msk.f32.gmra.mxu0 %vm63_vm0, %v29_v28  ;;  %585 = vmatmul.msk.f32.gmra.mxu2 %vm63_vm0, %v45_v29 }
  0x69   :  { %570 = vmatmul.msk.f32.gmra.mxu0 %vm63_vm0, %v30_v30  ;;  %586 = vmatmul.msk.f32.gmra.mxu2 %vm63_vm0, %v46_v31 }
  0x71   :  { %571 = vmatmul.msk.f32.gmra.mxu0 %vm63_vm0, %v31_v35  ;;  %587 = vmatmul.msk.f32.gmra.mxu2 %vm63_vm0, %v47_v36 }
  0x79   :  { %572 = vmatmul.msk.f32.gmra.mxu0 %vm63_vm0, %v32_v38  ;;  %588 = vmatmul.msk.f32.gmra.mxu2 %vm63_vm0, %v48_v39 }
  0x81   :  { %573 = vmatmul.msk.f32.gmra.mxu0 %vm63_vm0, %v33_v40  ;;  %589 = vmatmul.msk.f32.gmra.mxu2 %vm63_vm0, %v49_v41 }
  0x89   :  { %574 = vmatmul.msk.f32.gmra.mxu0 %vm63_vm0, %v34_v42  ;;  %590 = vmatmul.msk.f32.gmra.mxu2 %vm63_vm0, %v50_v43 }
  0x8e   :  { %v177_v45 = vpop.f32.mrf.mxu0 }
  0x8f   :  { %v178_v46 = vadd.f32 %v833_v44, %v177_v45 }
  0x91   :  { %274 = vst.msk [vmem:[%s1163_s4] sm:$0xff] %vm273_vm1, %v178_v46  ;;  %591 = vmatmul.msk.f32.vlgmr.msra.gmra.mxu1 %vm273_vm1, %v178_v46 }
  0x94   :  { %v225_v47 = vpop.f32.mrf.mxu2 }
  0x95   :  { %v842_v48 = vadd.f32 %v833_v44, %v225_v47 }
  0x96   :  { %v180_v49 = vpop.f32.mrf.mxu0 }
  0x97   :  { %290 = vst.msk [vmem:[%s1163_s4 + $0x80] sm:$0xff] %vm273_vm1, %v842_v48  ;;  %v181_v50 = vadd.f32 %v833_v44, %v180_v49 }
  0x99   :  { %275 = vst.msk [vmem:[%s1163_s4 + $0x8] sm:$0xff] %vm273_vm1, %v181_v50  ;;  %592 = vmatmul.msk.f32.gmra.mxu1 %vm273_vm1, %v181_v50 }
  0x9c   :  { %v228_v51 = vpop.f32.mrf.mxu2 }
  0x9d   :  { %v229_v52 = vadd.f32 %v833_v44, %v228_v51 }
  0x9e   :  { %v183_v53 = vpop.f32.mrf.mxu0 }
  0x9f   :  { %291 = vst.msk [vmem:[%s1163_s4 + $0x88] sm:$0xff] %vm273_vm1, %v229_v52  ;;  %v184_v54 = vadd.f32 %v833_v44, %v183_v53  ;;  %608 = vmatmul.msk.f32.vlgmr.msra.gmra.mxu3 %vm273_vm1, %v229_v52 }
  0xa1   :  { %276 = vst.msk [vmem:[%s1163_s4 + $0x10] sm:$0xff] %vm273_vm1, %v184_v54  ;;  %593 = vmatmul.msk.f32.gmra.mxu1 %vm273_vm1, %v184_v54 }
  0xa4   :  { %v231_v55 = vpop.f32.mrf.mxu2 }
  0xa5   :  { %v232_v56 = vadd.f32 %v833_v44, %v231_v55 }
  0xa6   :  { %v186_v57 = vpop.f32.mrf.mxu0 }
  0xa7   :  { %292 = vst.msk [vmem:[%s1163_s4 + $0x90] sm:$0xff] %vm273_vm1, %v232_v56  ;;  %v187_v58 = vadd.f32 %v833_v44, %v186_v57  ;;  %609 = vmatmul.msk.f32.gmra.mxu3 %vm273_vm1, %v232_v56 }
  0xa9   :  { %277 = vst.msk [vmem:[%s1163_s4 + $0x18] sm:$0xff] %vm273_vm1, %v187_v58  ;;  %594 = vmatmul.msk.f32.gmra.mxu1 %vm273_vm1, %v187_v58 }
  0xac   :  { %v234_v59 = vpop.f32.mrf.mxu2 }
  0xad   :  { %v235_v60 = vadd.f32 %v833_v44, %v234_v59 }
  0xae   :  { %v189_v61 = vpop.f32.mrf.mxu0 }
  0xaf   :  { %293 = vst.msk [vmem:[%s1163_s4 + $0x98] sm:$0xff] %vm273_vm1, %v235_v60  ;;  %v190_v62 = vadd.f32 %v833_v44, %v189_v61  ;;  %610 = vmatmul.msk.f32.gmra.mxu3 %vm273_vm1, %v235_v60 }
  0xb1   :  { %278 = vst.msk [vmem:[%s1163_s4 + $0x20] sm:$0xff] %vm273_vm1, %v190_v62  ;;  %595 = vmatmul.msk.f32.gmra.mxu1 %vm273_vm1, %v190_v62 }
  0xb4   :  { %v237_v63 = vpop.f32.mrf.mxu2 }
  0xb5   :  { %v238_v0 = vadd.f32 %v833_v44, %v237_v63 }
  0xb6   :  { %v192_v1 = vpop.f32.mrf.mxu0 }
  0xb7   :  { %294 = vst.msk [vmem:[%s1163_s4 + $0xa0] sm:$0xff] %vm273_vm1, %v238_v0  ;;  %v193_v2 = vadd.f32 %v833_v44, %v192_v1  ;;  %611 = vmatmul.msk.f32.gmra.mxu3 %vm273_vm1, %v238_v0 }
  0xb9   :  { %279 = vst.msk [vmem:[%s1163_s4 + $0x28] sm:$0xff] %vm273_vm1, %v193_v2  ;;  %596 = vmatmul.msk.f32.gmra.mxu1 %vm273_vm1, %v193_v2 }
  0xbc   :  { %v240_v3 = vpop.f32.mrf.mxu2 }
  0xbd   :  { %v241_v4 = vadd.f32 %v833_v44, %v240_v3 }
  0xbe   :  { %v195_v5 = vpop.f32.mrf.mxu0 }
  0xbf   :  { %295 = vst.msk [vmem:[%s1163_s4 + $0xa8] sm:$0xff] %vm273_vm1, %v241_v4  ;;  %v196_v6 = vadd.f32 %v833_v44, %v195_v5  ;;  %612 = vmatmul.msk.f32.gmra.mxu3 %vm273_vm1, %v241_v4 }
  0xc1   :  { %280 = vst.msk [vmem:[%s1163_s4 + $0x30] sm:$0xff] %vm273_vm1, %v196_v6  ;;  %597 = vmatmul.msk.f32.gmra.mxu1 %vm273_vm1, %v196_v6 }
  0xc4   :  { %v243_v7 = vpop.f32.mrf.mxu2 }
  0xc5   :  { %v244_v8 = vadd.f32 %v833_v44, %v243_v7 }
  0xc6   :  { %v198_v9 = vpop.f32.mrf.mxu0 }
  0xc7   :  { %296 = vst.msk [vmem:[%s1163_s4 + $0xb0] sm:$0xff] %vm273_vm1, %v244_v8  ;;  %v199_v10 = vadd.f32 %v833_v44, %v198_v9  ;;  %613 = vmatmul.msk.f32.gmra.mxu3 %vm273_vm1, %v244_v8 }
  0xc9   :  { %281 = vst.msk [vmem:[%s1163_s4 + $0x38] sm:$0xff] %vm273_vm1, %v199_v10  ;;  %598 = vmatmul.msk.f32.gmra.mxu1 %vm273_vm1, %v199_v10 }
  0xcc   :  { %v246_v11 = vpop.f32.mrf.mxu2 }
  0xcd   :  { %v247_v12 = vadd.f32 %v833_v44, %v246_v11 }
  0xce   :  { %v201_v13 = vpop.f32.mrf.mxu0 }
  0xcf   :  { %297 = vst.msk [vmem:[%s1163_s4 + $0xb8] sm:$0xff] %vm273_vm1, %v247_v12  ;;  %v202_v14 = vadd.f32 %v833_v44, %v201_v13  ;;  %614 = vmatmul.msk.f32.gmra.mxu3 %vm273_vm1, %v247_v12 }
  0xd1   :  { %282 = vst.msk [vmem:[%s1163_s4 + $0x40] sm:$0xff] %vm273_vm1, %v202_v14  ;;  %599 = vmatmul.msk.f32.gmra.mxu1 %vm273_vm1, %v202_v14 }
  0xd4   :  { %v249_v15 = vpop.f32.mrf.mxu2 }
  0xd5   :  { %v250_v16 = vadd.f32 %v833_v44, %v249_v15 }
  0xd6   :  { %v204_v17 = vpop.f32.mrf.mxu0 }
  0xd7   :  { %298 = vst.msk [vmem:[%s1163_s4 + $0xc0] sm:$0xff] %vm273_vm1, %v250_v16  ;;  %v205_v18 = vadd.f32 %v833_v44, %v204_v17  ;;  %615 = vmatmul.msk.f32.gmra.mxu3 %vm273_vm1, %v250_v16 }
  0xd9   :  { %283 = vst.msk [vmem:[%s1163_s4 + $0x48] sm:$0xff] %vm273_vm1, %v205_v18  ;;  %600 = vmatmul.msk.f32.gmra.mxu1 %vm273_vm1, %v205_v18 }
  0xdc   :  { %v252_v19 = vpop.f32.mrf.mxu2 }
  0xdd   :  { %v253_v20 = vadd.f32 %v833_v44, %v252_v19 }
  0xde   :  { %v207_v21 = vpop.f32.mrf.mxu0 }
  0xdf   :  { %299 = vst.msk [vmem:[%s1163_s4 + $0xc8] sm:$0xff] %vm273_vm1, %v253_v20  ;;  %v208_v22 = vadd.f32 %v833_v44, %v207_v21  ;;  %616 = vmatmul.msk.f32.gmra.mxu3 %vm273_vm1, %v253_v20 }
  0xe1   :  { %284 = vst.msk [vmem:[%s1163_s4 + $0x50] sm:$0xff] %vm273_vm1, %v208_v22  ;;  %601 = vmatmul.msk.f32.gmra.mxu1 %vm273_vm1, %v208_v22 }
  0xe4   :  { %v255_v23 = vpop.f32.mrf.mxu2 }
  0xe5   :  { %v256_v24 = vadd.f32 %v833_v44, %v255_v23 }
  0xe6   :  { %v210_v25 = vpop.f32.mrf.mxu0 }
  0xe7   :  { %300 = vst.msk [vmem:[%s1163_s4 + $0xd0] sm:$0xff] %vm273_vm1, %v256_v24  ;;  %v211_v26 = vadd.f32 %v833_v44, %v210_v25  ;;  %617 = vmatmul.msk.f32.gmra.mxu3 %vm273_vm1, %v256_v24 }
  0xe9   :  { %285 = vst.msk [vmem:[%s1163_s4 + $0x58] sm:$0xff] %vm273_vm1, %v211_v26  ;;  %602 = vmatmul.msk.f32.gmra.mxu1 %vm273_vm1, %v211_v26 }
  0xec   :  { %v258_v27 = vpop.f32.mrf.mxu2 }
  0xed   :  { %v259_v28 = vadd.f32 %v833_v44, %v258_v27 }
  0xee   :  { %v213_v29 = vpop.f32.mrf.mxu0 }
  0xef   :  { %301 = vst.msk [vmem:[%s1163_s4 + $0xd8] sm:$0xff] %vm273_vm1, %v259_v28  ;;  %v214_v30 = vadd.f32 %v833_v44, %v213_v29  ;;  %618 = vmatmul.msk.f32.gmra.mxu3 %vm273_vm1, %v259_v28 }
  0xf1   :  { %286 = vst.msk [vmem:[%s1163_s4 + $0x60] sm:$0xff] %vm273_vm1, %v214_v30  ;;  %603 = vmatmul.msk.f32.gmra.mxu1 %vm273_vm1, %v214_v30 }
  0xf4   :  { %v261_v31 = vpop.f32.mrf.mxu2 }
  0xf5   :  { %v262_v32 = vadd.f32 %v833_v44, %v261_v31 }
  0xf6   :  { %v216_v33 = vpop.f32.mrf.mxu0 }
  0xf7   :  { %302 = vst.msk [vmem:[%s1163_s4 + $0xe0] sm:$0xff] %vm273_vm1, %v262_v32  ;;  %v217_v34 = vadd.f32 %v833_v44, %v216_v33  ;;  %619 = vmatmul.msk.f32.gmra.mxu3 %vm273_vm1, %v262_v32 }
  0xf9   :  { %287 = vst.msk [vmem:[%s1163_s4 + $0x68] sm:$0xff] %vm273_vm1, %v217_v34  ;;  %604 = vmatmul.msk.f32.gmra.mxu1 %vm273_vm1, %v217_v34 }
  0xfc   :  { %v264_v35 = vpop.f32.mrf.mxu2 }
  0xfd   :  { %v265_v36 = vadd.f32 %v833_v44, %v264_v35 }
  0xfe   :  { %v219_v37 = vpop.f32.mrf.mxu0 }
  0xff   :  { %303 = vst.msk [vmem:[%s1163_s4 + $0xe8] sm:$0xff] %vm273_vm1, %v265_v36  ;;  %v220_v38 = vadd.f32 %v833_v44, %v219_v37  ;;  %620 = vmatmul.msk.f32.gmra.mxu3 %vm273_vm1, %v265_v36 }
 0x101   :  { %288 = vst.msk [vmem:[%s1163_s4 + $0x70] sm:$0xff] %vm273_vm1, %v220_v38  ;;  %605 = vmatmul.msk.f32.gmra.mxu1 %vm273_vm1, %v220_v38 }
 0x104   :  { %v267_v39 = vpop.f32.mrf.mxu2 }
 0x105   :  { %v268_v40 = vadd.f32 %v833_v44, %v267_v39 }
 0x106   :  { %v222_v41 = vpop.f32.mrf.mxu0 }
 0x107   :  { %304 = vst.msk [vmem:[%s1163_s4 + $0xf0] sm:$0xff] %vm273_vm1, %v268_v40  ;;  %v223_v42 = vadd.f32 %v833_v44, %v222_v41  ;;  %621 = vmatmul.msk.f32.gmra.mxu3 %vm273_vm1, %v268_v40 }
 0x109   :  { %289 = vst.msk [vmem:[%s1163_s4 + $0x78] sm:$0xff] %vm273_vm1, %v223_v42  ;;  %606 = vmatmul.msk.f32.gmra.mxu1 %vm273_vm1, %v223_v42 }
 0x10c   :  { %v270_v43 = vpop.f32.mrf.mxu2 }
 0x10d   :  { %v271_v45 = vadd.f32 %v833_v44, %v270_v43 }
 0x10e   :  { %v423_v46 = vpop.f32.mrf.mxu1 }
 0x10f   :  { %305 = vst.msk [vmem:[%s1163_s4 + $0xf8] sm:$0xff] %vm273_vm1, %v271_v45  ;;  %622 = vmatmul.msk.f32.gmra.mxu3 %vm273_vm1, %v271_v45 }
 0x110   :  { %519 = vst.msk [vmem:[%s1164_s5] sm:$0xff] %vm273_vm1, %v423_v46 }
 0x111   :  { %607 = vmatmul.msk.f32.gmra.mxu1 %vm273_vm1, %v842_v48 }
 0x116   :  { %v426_v47 = vpop.f32.mrf.mxu1 }
 0x117   :  { %520 = vst.msk [vmem:[%s1164_s5 + $0x8] sm:$0xff] %vm273_vm1, %v426_v47 }
 0x11e   :  { %v429_v44 = vpop.f32.mrf.mxu1 }
 0x11f   :  { %521 = vst.msk [vmem:[%s1164_s5 + $0x10] sm:$0xff] %vm273_vm1, %v429_v44 }
 0x122   :  { %v474_v49 = vpop.f32.mrf.mxu3 }
 0x123   :  { %536 = vst.msk [vmem:[%s1164_s5 + $0x88] sm:$0xff] %vm273_vm1, %v474_v49 }
 0x126   :  { %v432_v50 = vpop.f32.mrf.mxu1 }
 0x127   :  { %522 = vst.msk [vmem:[%s1164_s5 + $0x18] sm:$0xff] %vm273_vm1, %v432_v50 }
 0x12a   :  { %v477_v48 = vpop.f32.mrf.mxu3 }
 0x12b   :  { %537 = vst.msk [vmem:[%s1164_s5 + $0x90] sm:$0xff] %vm273_vm1, %v477_v48 }
 0x12e   :  { %v435_v51 = vpop.f32.mrf.mxu1 }
 0x12f   :  { %523 = vst.msk [vmem:[%s1164_s5 + $0x20] sm:$0xff] %vm273_vm1, %v435_v51 }
 0x132   :  { %v480_v52 = vpop.f32.mrf.mxu3 }
 0x133   :  { %538 = vst.msk [vmem:[%s1164_s5 + $0x98] sm:$0xff] %vm273_vm1, %v480_v52 }
 0x136   :  { %v438_v53 = vpop.f32.mrf.mxu1 }
 0x137   :  { %524 = vst.msk [vmem:[%s1164_s5 + $0x28] sm:$0xff] %vm273_vm1, %v438_v53 }
 0x13a   :  { %v483_v54 = vpop.f32.mrf.mxu3 }
 0x13b   :  { %539 = vst.msk [vmem:[%s1164_s5 + $0xa0] sm:$0xff] %vm273_vm1, %v483_v54 }
 0x13e   :  { %v441_v55 = vpop.f32.mrf.mxu1 }
 0x13f   :  { %525 = vst.msk [vmem:[%s1164_s5 + $0x30] sm:$0xff] %vm273_vm1, %v441_v55 }
 0x142   :  { %v486_v56 = vpop.f32.mrf.mxu3 }
 0x143   :  { %540 = vst.msk [vmem:[%s1164_s5 + $0xa8] sm:$0xff] %vm273_vm1, %v486_v56 }
 0x146   :  { %v444_v57 = vpop.f32.mrf.mxu1 }
 0x147   :  { %526 = vst.msk [vmem:[%s1164_s5 + $0x38] sm:$0xff] %vm273_vm1, %v444_v57 }
 0x14a   :  { %v489_v58 = vpop.f32.mrf.mxu3 }
 0x14b   :  { %541 = vst.msk [vmem:[%s1164_s5 + $0xb0] sm:$0xff] %vm273_vm1, %v489_v58 }
 0x14e   :  { %v447_v59 = vpop.f32.mrf.mxu1 }
 0x14f   :  { %527 = vst.msk [vmem:[%s1164_s5 + $0x40] sm:$0xff] %vm273_vm1, %v447_v59 }
 0x152   :  { %v492_v60 = vpop.f32.mrf.mxu3 }
 0x153   :  { %542 = vst.msk [vmem:[%s1164_s5 + $0xb8] sm:$0xff] %vm273_vm1, %v492_v60 }
 0x156   :  { %v450_v61 = vpop.f32.mrf.mxu1 }
 0x157   :  { %528 = vst.msk [vmem:[%s1164_s5 + $0x48] sm:$0xff] %vm273_vm1, %v450_v61 }
 0x15a   :  { %v495_v62 = vpop.f32.mrf.mxu3 }
 0x15b   :  { %543 = vst.msk [vmem:[%s1164_s5 + $0xc0] sm:$0xff] %vm273_vm1, %v495_v62 }
 0x15e   :  { %v453_v63 = vpop.f32.mrf.mxu1 }
 0x15f   :  { %529 = vst.msk [vmem:[%s1164_s5 + $0x50] sm:$0xff] %vm273_vm1, %v453_v63 }
 0x162   :  { %v498_v0 = vpop.f32.mrf.mxu3 }
 0x163   :  { %544 = vst.msk [vmem:[%s1164_s5 + $0xc8] sm:$0xff] %vm273_vm1, %v498_v0 }
 0x166   :  { %v456_v1 = vpop.f32.mrf.mxu1 }
 0x167   :  { %530 = vst.msk [vmem:[%s1164_s5 + $0x58] sm:$0xff] %vm273_vm1, %v456_v1 }
 0x16a   :  { %v501_v2 = vpop.f32.mrf.mxu3 }
 0x16b   :  { %545 = vst.msk [vmem:[%s1164_s5 + $0xd0] sm:$0xff] %vm273_vm1, %v501_v2 }
 0x16e   :  { %v459_v3 = vpop.f32.mrf.mxu1 }
 0x16f   :  { %531 = vst.msk [vmem:[%s1164_s5 + $0x60] sm:$0xff] %vm273_vm1, %v459_v3 }
 0x172   :  { %v504_v4 = vpop.f32.mrf.mxu3 }
 0x173   :  { %546 = vst.msk [vmem:[%s1164_s5 + $0xd8] sm:$0xff] %vm273_vm1, %v504_v4 }
 0x176   :  { %v462_v5 = vpop.f32.mrf.mxu1 }
 0x177   :  { %532 = vst.msk [vmem:[%s1164_s5 + $0x68] sm:$0xff] %vm273_vm1, %v462_v5 }
 0x17a   :  { %v507_v6 = vpop.f32.mrf.mxu3 }
 0x17b   :  { %547 = vst.msk [vmem:[%s1164_s5 + $0xe0] sm:$0xff] %vm273_vm1, %v507_v6 }
 0x17e   :  { %v465_v7 = vpop.f32.mrf.mxu1 }
 0x17f   :  { %533 = vst.msk [vmem:[%s1164_s5 + $0x70] sm:$0xff] %vm273_vm1, %v465_v7 }
 0x182   :  { %v510_v8 = vpop.f32.mrf.mxu3 }
 0x183   :  { %548 = vst.msk [vmem:[%s1164_s5 + $0xe8] sm:$0xff] %vm273_vm1, %v510_v8 }
 0x186   :  { %v468_v9 = vpop.f32.mrf.mxu1 }
 0x187   :  { %534 = vst.msk [vmem:[%s1164_s5 + $0x78] sm:$0xff] %vm273_vm1, %v468_v9 }
 0x18a   :  { %v513_v10 = vpop.f32.mrf.mxu3 }
 0x18b   :  { %549 = vst.msk [vmem:[%s1164_s5 + $0xf0] sm:$0xff] %vm273_vm1, %v513_v10 }
 0x18e   :  { %v471_v11 = vpop.f32.mrf.mxu1 }
 0x18f   :  { %535 = vst.msk [vmem:[%s1164_s5 + $0x80] sm:$0xff] %vm273_vm1, %v471_v11 }
 0x192   :  { %v516_v12 = vpop.f32.mrf.mxu3 }
 0x193   :  { %550 = vst.msk [vmem:[%s1164_s5 + $0xf8] sm:$0xff] %vm273_vm1, %v516_v12 }

</bundles_post_ra>
